<compile_context>
chip_gen: v7x
topology: tpu7x:2x2x1
jax: 0.10.0
libtpu: 0.0.40
codegen_flags: <defaults>
</compile_context>

<pallas_src>
import math
import functools

import jax
import jax.numpy as jnp
from jax.experimental import pallas as pl
from jax.experimental.pallas import tpu as pltpu


# ---------------------------------------------------------------------------
# Phase 1 / Phase 3: generic row-tiled linear  y = x @ W + b
# ---------------------------------------------------------------------------
def _linear_kernel(x_ref, w_ref, b_ref, o_ref):
    acc = jnp.dot(x_ref[...], w_ref[...], preferred_element_type=jnp.float32)
    o_ref[...] = (acc + b_ref[...].astype(jnp.float32)).astype(o_ref.dtype)


def linear(x2d, w, b, *, out_dtype=None, row_tile=256):
    """x2d: [R, Din], w: [Din, Dout], b: [1, Dout] -> [R, Dout]."""
    R, Din = x2d.shape
    Dout = w.shape[1]
    out_dtype = out_dtype or x2d.dtype
    tr = min(row_tile, R)

    # NOTE: weight/bias index maps are constant, so their blocks are not
    # re-fetched across row tiles.  (Could additionally single-buffer them
    # via pipeline_mode=pl.Buffered(1) to save VMEM on v7x.)
    return pl.pallas_call(
        _linear_kernel,
        out_shape=jax.ShapeDtypeStruct((R, Dout), out_dtype),
        grid_spec=pltpu.PrefetchScalarGridSpec(
            num_scalar_prefetch=0,
            grid=(pl.cdiv(R, tr),),
            in_specs=[
                pl.BlockSpec((tr, Din), lambda i: (i, 0)),
                pl.BlockSpec((Din, Dout), lambda i: (0, 0)),
                pl.BlockSpec((1, Dout), lambda i: (0, 0)),
            ],
            out_specs=pl.BlockSpec((tr, Dout), lambda i: (i, 0)),
        ),
        compiler_params=pltpu.CompilerParams(
            dimension_semantics=("parallel",)),
    )(x2d, w, b)


# ---------------------------------------------------------------------------
# Phase 2: attention core on [B, H, S, d] layout
# ---------------------------------------------------------------------------
def _attn_core_kernel(q_ref, k_ref, v_ref, ctx_ref, attn_ref):
    # q_ref: [1, H, TQ, d]   k_ref/v_ref: [1, H, Sk, d]
    q = q_ref[0]            # [H, TQ, d]  (native dtype, already pre-scaled)
    k = k_ref[0]            # [H, Sk, d]
    v = v_ref[0]            # [H, Sk, d]

    # All heads at once, leading-batch dot_general -> no per-head lane slices.
    scores = jnp.einsum("hqd,hkd->hqk", q, k,
                        preferred_element_type=jnp.float32)   # [H, TQ, Sk] f32

    scores = scores - jnp.max(scores, axis=-1, keepdims=True)
    e = jnp.exp(scores)
    denom = jnp.sum(e, axis=-1, keepdims=True)
    attn = e * pl.reciprocal(denom, approx=True)               # f32 softmax

    # TODO(synk): nn.Dropout on attn omitted (identity, eval mode).
    # TODO(synk): for very long Sk, switch to an online-softmax (flash) inner
    # loop over Sk tiles instead of materializing full [H, TQ, Sk] scores.

    # top_attn = attention of head 0.
    attn_ref[0] = attn[0].astype(attn_ref.dtype)

    ctx = jnp.einsum("hqk,hkd->hqd", attn.astype(v.dtype), v,
                     preferred_element_type=jnp.float32)       # [H, TQ, d]
    ctx_ref[0] = ctx.astype(ctx_ref.dtype)


def attention_core(qh, kh, vh, *, out_dtype, q_tile=256):
    """qh: [B, H, Sq, d], kh/vh: [B, H, Sk, d] -> ([B,H,Sq,d], [B,Sq,Sk])."""
    B, H, Sq, d = qh.shape
    Sk = kh.shape[2]
    tq = min(q_tile, Sq)

    return pl.pallas_call(
        _attn_core_kernel,
        out_shape=(
            jax.ShapeDtypeStruct((B, H, Sq, d), out_dtype),
            jax.ShapeDtypeStruct((B, Sq, Sk), jnp.float32),
        ),
        grid_spec=pltpu.PrefetchScalarGridSpec(
            num_scalar_prefetch=0,
            grid=(B, pl.cdiv(Sq, tq)),
            in_specs=[
                pl.BlockSpec((1, H, tq, d), lambda b, qi: (b, 0, qi, 0)),
                pl.BlockSpec((1, H, Sk, d), lambda b, qi: (b, 0, 0, 0)),
                pl.BlockSpec((1, H, Sk, d), lambda b, qi: (b, 0, 0, 0)),
            ],
            out_specs=[
                pl.BlockSpec((1, H, tq, d), lambda b, qi: (b, 0, qi, 0)),
                pl.BlockSpec((1, tq, Sk), lambda b, qi: (b, qi, 0)),
            ],
        ),
        compiler_params=pltpu.CompilerParams(
            dimension_semantics=("parallel", "parallel")),
    )(qh, kh, vh)


# ---------------------------------------------------------------------------
# Full module forward
# ---------------------------------------------------------------------------
def multi_head_attention(key, value, query, params, head_count,
                         *, q_tile=256, row_tile=256):
    B, Sk, D = key.shape
    Sq = query.shape[1]
    assert D % head_count == 0
    d = D // head_count
    dtype = query.dtype

    wk, bk, wv, bv, wq, bq, wo, bo = params

    # Fold 1/sqrt(d) into the query projection (removes per-tile VPU scale).
    scale = 1.0 / math.sqrt(d)
    wq_s = wq * scale
    bq_s = bq * scale

    # --- projections (row-tiled over B*S rows) ---
    # NOTE: K/V/Q take different input tensors in the general (cross-attn)
    # case, so the three projections cannot be fused into one [D, 3D] matmul
    # without assuming key is value is query.
    K = linear(key.reshape(B * Sk, D), wk, bk, row_tile=row_tile)
    V = linear(value.reshape(B * Sk, D), wv, bv, row_tile=row_tile)
    Q = linear(query.reshape(B * Sq, D), wq_s, bq_s, row_tile=row_tile)

    # --- shape heads: [B, S, D] -> [B, H, S, d]  (wrapper-level plumbing) ---
    def shape_heads(x, S):
        return jnp.transpose(x.reshape(B, S, head_count, d), (0, 2, 1, 3))

    Kh = shape_heads(K, Sk)
    Vh = shape_heads(V, Sk)
    Qh = shape_heads(Q, Sq)

    # --- attention core ---
    ctx, top_attn = attention_core(Qh, Kh, Vh, out_dtype=dtype, q_tile=q_tile)

    # --- unshape + final linear ---
    context = jnp.transpose(ctx, (0, 2, 1, 3)).reshape(B * Sq, D)
    out = linear(context, wo, bo, row_tile=row_tile).reshape(B, Sq, D)
    return out, top_attn


def init_params(rng, model_dim):
    """Deterministic nn.Linear-style init: U(-1/sqrt(in), 1/sqrt(in))."""
    bound = 1.0 / math.sqrt(model_dim)
    keys = jax.random.split(rng, 8)

    def lin(kw, kb):
        w = jax.random.uniform(kw, (model_dim, model_dim), jnp.float32,
                               minval=-bound, maxval=bound)
        b = jax.random.uniform(kb, (1, model_dim), jnp.float32,
                               minval=-bound, maxval=bound)
        return w, b

    wk, bk = lin(keys[0], keys[1])
    wv, bv = lin(keys[2], keys[3])
    wq, bq = lin(keys[4], keys[5])
    wo, bo = lin(keys[6], keys[7])
    return (wk, bk, wv, bv, wq, bq, wo, bo)


if __name__ == "__main__":
    head_count = 4
    model_dim = 32
    batch = 2
    key_len = 8
    query_len = 8

    root = jax.random.PRNGKey(0)
    k_in, k_key, k_val, k_qry = jax.random.split(root, 4)

    params = init_params(k_in, model_dim)
    key = jax.random.normal(k_key, (batch, key_len, model_dim), jnp.float32)
    value = jax.random.normal(k_val, (batch, key_len, model_dim), jnp.float32)
    query = jax.random.normal(k_qry, (batch, query_len, model_dim), jnp.float32)

    mha = jax.jit(multi_head_attention, static_argnames=("head_count",))
    out, top_attn = mha(key, value, query, params, head_count=head_count)
    jax.block_until_ready((out, top_attn))

    # pure-JAX reference check
    wk, bk, wv, bv, wq, bq, wo, bo = params
    d = model_dim // head_count

    def shape_heads_ref(x):
        return x.reshape(batch, -1, head_count, d).transpose(0, 2, 1, 3)

    K = shape_heads_ref(key @ wk + bk)
    V = shape_heads_ref(value @ wv + bv)
    Q = shape_heads_ref(query @ wq + bq) / math.sqrt(d)
    scores = jnp.einsum("bhqd,bhkd->bhqk", Q, K)
    attn_ref = jax.nn.softmax(scores, axis=-1)
    ctx = jnp.einsum("bhqk,bhkd->bhqd", attn_ref, V)
    ctx = ctx.transpose(0, 2, 1, 3).reshape(batch, query_len, model_dim)
    out_ref = ctx @ wo + bo

    # Tolerances loosened slightly for pl.reciprocal(approx=True) in softmax.
    assert jnp.allclose(out, out_ref, atol=1e-2, rtol=1e-2), "output mismatch"
    assert jnp.allclose(top_attn, attn_ref[:, 0], atol=2e-3), "attn mismatch"

    print("KERNEL_OK")
</pallas_src>

<mosaic_0001>
module attributes {stable_mosaic.version = 11 : i64} {
  func.func @_linear_kernel(%arg0: i32, %arg1: memref<16x32xf32, #tpu.memory_space<vmem>>, %arg2: memref<32x32xf32, #tpu.memory_space<vmem>>, %arg3: memref<1x32xf32, #tpu.memory_space<vmem>>, %arg4: memref<16x32xf32, #tpu.memory_space<vmem>>) attributes {dimension_semantics = [#tpu.dimension_semantics<parallel>], iteration_bounds = array<i64: 1>, scalar_prefetch = 0 : i64, scratch_operands = 0 : i64, tpu.core_type = #tpu.core_type<tc>, window_params = [{transform_indices = @transform_0, window_bounds = array<i64: 16, 32>}, {pipeline_mode = #tpu.pipeline_mode<synchronous>, transform_indices = @transform_1, window_bounds = array<i64: 32, 32>}, {pipeline_mode = #tpu.pipeline_mode<synchronous>, transform_indices = @transform_2, window_bounds = array<i64: 1, 32>}, {transform_indices = @transform_3, window_bounds = array<i64: 16, 32>}]} {
    %c0 = arith.constant 0 : index
    %c0_0 = arith.constant 0 : index
    %0 = vector.load %arg1[%c0, %c0_0] : memref<16x32xf32, #tpu.memory_space<vmem>>, vector<16x32xf32>
    %c0_1 = arith.constant 0 : index
    %c0_2 = arith.constant 0 : index
    %1 = vector.load %arg2[%c0_1, %c0_2] : memref<32x32xf32, #tpu.memory_space<vmem>>, vector<32x32xf32>
    %cst = arith.constant dense<0.000000e+00> : vector<16x32xf32>
    %2 = tpu.matmul %0, %1, %cst {dimension_numbers = #tpu.dot_dimension_numbers<[1], [0], [0], [1], [0, 0, 1, 1], [], []>} : vector<16x32xf32>, vector<32x32xf32>, vector<16x32xf32> -> vector<16x32xf32>
    %c0_3 = arith.constant 0 : index
    %c0_4 = arith.constant 0 : index
    %3 = vector.load %arg3[%c0_3, %c0_4] : memref<1x32xf32, #tpu.memory_space<vmem>>, vector<1x32xf32>
    %4 = vector.broadcast %3 : vector<1x32xf32> to vector<16x32xf32>
    %5 = arith.addf %2, %4 : vector<16x32xf32>
    %c0_5 = arith.constant 0 : index
    %c0_6 = arith.constant 0 : index
    %6 = vector.load %arg4[%c0_5, %c0_6] : memref<16x32xf32, #tpu.memory_space<vmem>>, vector<16x32xf32>
    tpu.vector_store %arg4[%c0_5, %c0_6], %5 {strides = array<i32>} : memref<16x32xf32, #tpu.memory_space<vmem>>, vector<16x32xf32>,
    return
  }
  func.func @transform_0(%arg0: i32) -> (i32, i32) {
    %c0_i32 = arith.constant 0 : i32
    %c0_i32_0 = arith.constant 0 : i32
    return %arg0, %c0_i32 : i32, i32
  }
  func.func @transform_1(%arg0: i32) -> (i32, i32) {
    %c0_i32 = arith.constant 0 : i32
    %c0_i32_0 = arith.constant 0 : i32
    %c0_i32_1 = arith.constant 0 : i32
    return %c0_i32, %c0_i32_0 : i32, i32
  }
  func.func @transform_2(%arg0: i32) -> (i32, i32) {
    %c0_i32 = arith.constant 0 : i32
    %c0_i32_0 = arith.constant 0 : i32
    %c0_i32_1 = arith.constant 0 : i32
    return %c0_i32, %c0_i32_0 : i32, i32
  }
  func.func @transform_3(%arg0: i32) -> (i32, i32) {
    %c0_i32 = arith.constant 0 : i32
    %c0_i32_0 = arith.constant 0 : i32
    return %arg0, %c0_i32 : i32, i32
  }
}

module attributes {stable_mosaic.version = 11 : i64} {
  func.func @_linear_kernel(%arg0: i32, %arg1: memref<16x32xf32, #tpu.memory_space<vmem>>, %arg2: memref<32x32xf32, #tpu.memory_space<vmem>>, %arg3: memref<1x32xf32, #tpu.memory_space<vmem>>, %arg4: memref<16x32xf32, #tpu.memory_space<vmem>>) attributes {dimension_semantics = [#tpu.dimension_semantics<parallel>], iteration_bounds = array<i64: 1>, scalar_prefetch = 0 : i64, scratch_operands = 0 : i64, tpu.core_type = #tpu.core_type<tc>, window_params = [{transform_indices = @transform_0, window_bounds = array<i64: 16, 32>}, {pipeline_mode = #tpu.pipeline_mode<synchronous>, transform_indices = @transform_1, window_bounds = array<i64: 32, 32>}, {pipeline_mode = #tpu.pipeline_mode<synchronous>, transform_indices = @transform_2, window_bounds = array<i64: 1, 32>}, {transform_indices = @transform_3, window_bounds = array<i64: 16, 32>}]} {
    %c0 = arith.constant 0 : index
    %c0_0 = arith.constant 0 : index
    %0 = vector.load %arg1[%c0, %c0_0] : memref<16x32xf32, #tpu.memory_space<vmem>>, vector<16x32xf32>
    %c0_1 = arith.constant 0 : index
    %c0_2 = arith.constant 0 : index
    %1 = vector.load %arg2[%c0_1, %c0_2] : memref<32x32xf32, #tpu.memory_space<vmem>>, vector<32x32xf32>
    %cst = arith.constant dense<0.000000e+00> : vector<16x32xf32>
    %2 = tpu.matmul %0, %1, %cst {dimension_numbers = #tpu.dot_dimension_numbers<[1], [0], [0], [1], [0, 0, 1, 1], [], []>} : vector<16x32xf32>, vector<32x32xf32>, vector<16x32xf32> -> vector<16x32xf32>
    %c0_3 = arith.constant 0 : index
    %c0_4 = arith.constant 0 : index
    %3 = vector.load %arg3[%c0_3, %c0_4] : memref<1x32xf32, #tpu.memory_space<vmem>>, vector<1x32xf32>
    %4 = vector.broadcast %3 : vector<1x32xf32> to vector<16x32xf32>
    %5 = arith.addf %2, %4 : vector<16x32xf32>
    %c0_5 = arith.constant 0 : index
    %c0_6 = arith.constant 0 : index
    %6 = vector.load %arg4[%c0_5, %c0_6] : memref<16x32xf32, #tpu.memory_space<vmem>>, vector<16x32xf32>
    tpu.vector_store %arg4[%c0_5, %c0_6], %5 {strides = array<i32>} : memref<16x32xf32, #tpu.memory_space<vmem>>, vector<16x32xf32>,
    return
  }
  func.func @transform_0(%arg0: i32) -> (i32, i32) {
    %c0_i32 = arith.constant 0 : i32
    %c0_i32_0 = arith.constant 0 : i32
    return %arg0, %c0_i32 : i32, i32
  }
  func.func @transform_1(%arg0: i32) -> (i32, i32) {
    %c0_i32 = arith.constant 0 : i32
    %c0_i32_0 = arith.constant 0 : i32
    %c0_i32_1 = arith.constant 0 : i32
    return %c0_i32, %c0_i32_0 : i32, i32
  }
  func.func @transform_2(%arg0: i32) -> (i32, i32) {
    %c0_i32 = arith.constant 0 : i32
    %c0_i32_0 = arith.constant 0 : i32
    %c0_i32_1 = arith.constant 0 : i32
    return %c0_i32, %c0_i32_0 : i32, i32
  }
  func.func @transform_3(%arg0: i32) -> (i32, i32) {
    %c0_i32 = arith.constant 0 : i32
    %c0_i32_0 = arith.constant 0 : i32
    return %arg0, %c0_i32 : i32, i32
  }
}

module attributes {stable_mosaic.version = 11 : i64} {
  func.func @_attn_core_kernel(%arg0: i32, %arg1: i32, %arg2: memref<1x4x8x8xf32, #tpu.memory_space<vmem>>, %arg3: memref<1x4x8x8xf32, #tpu.memory_space<vmem>>, %arg4: memref<1x4x8x8xf32, #tpu.memory_space<vmem>>, %arg5: memref<1x4x8x8xf32, #tpu.memory_space<vmem>>, %arg6: memref<1x8x8xf32, #tpu.memory_space<vmem>>) attributes {dimension_semantics = [#tpu.dimension_semantics<parallel>, #tpu.dimension_semantics<parallel>], iteration_bounds = array<i64: 2, 1>, scalar_prefetch = 0 : i64, scratch_operands = 0 : i64, tpu.core_type = #tpu.core_type<tc>, window_params = [{transform_indices = @transform_0, window_bounds = array<i64: 1, 4, 8, 8>}, {transform_indices = @transform_1, window_bounds = array<i64: 1, 4, 8, 8>}, {transform_indices = @transform_2, window_bounds = array<i64: 1, 4, 8, 8>}, {transform_indices = @transform_3, window_bounds = array<i64: 1, 4, 8, 8>}, {transform_indices = @transform_4, window_bounds = array<i64: 1, 8, 8>}]} {
    %c0 = arith.constant 0 : index
    %c0_0 = arith.constant 0 : index
    %c0_1 = arith.constant 0 : index
    %c0_2 = arith.constant 0 : index
    %0 = vector.load %arg2[%c0, %c0_0, %c0_1, %c0_2] : memref<1x4x8x8xf32, #tpu.memory_space<vmem>>, vector<1x4x8x8xf32>
    %1 = vector.shape_cast %0 : vector<1x4x8x8xf32> to vector<4x8x8xf32>
    %c0_3 = arith.constant 0 : index
    %c0_4 = arith.constant 0 : index
    %c0_5 = arith.constant 0 : index
    %c0_6 = arith.constant 0 : index
    %2 = vector.load %arg3[%c0_3, %c0_4, %c0_5, %c0_6] : memref<1x4x8x8xf32, #tpu.memory_space<vmem>>, vector<1x4x8x8xf32>
    %3 = vector.shape_cast %2 : vector<1x4x8x8xf32> to vector<4x8x8xf32>
    %c0_7 = arith.constant 0 : index
    %c0_8 = arith.constant 0 : index
    %c0_9 = arith.constant 0 : index
    %c0_10 = arith.constant 0 : index
    %4 = vector.load %arg4[%c0_7, %c0_8, %c0_9, %c0_10] : memref<1x4x8x8xf32, #tpu.memory_space<vmem>>, vector<1x4x8x8xf32>
    %5 = vector.shape_cast %4 : vector<1x4x8x8xf32> to vector<4x8x8xf32>
    "tpu.trace_start"() <{level = 10 : i32, message = "hqd,hkd->hqk"}> : () -> ()
    %cst = arith.constant dense<0.000000e+00> : vector<4x8x8xf32>
    %6 = tpu.matmul %1, %3, %cst {dimension_numbers = #tpu.dot_dimension_numbers<[2], [2], [1], [1], [0, 0, 0, 1, 1, 1], [0], [0]>} : vector<4x8x8xf32>, vector<4x8x8xf32>, vector<4x8x8xf32> -> vector<4x8x8xf32>
    "tpu.trace_stop"() : () -> ()
    %cst_11 = arith.constant dense<0xFF800000> : vector<4x8xf32>
    %7 = vector.multi_reduction <maximumf>, %6, %cst_11 [2] : vector<4x8x8xf32> to vector<4x8xf32>
    %8 = vector.shape_cast %7 : vector<4x8xf32> to vector<4x8x1xf32>
    %9 = vector.broadcast %8 : vector<4x8x1xf32> to vector<4x8x8xf32>
    %10 = arith.subf %6, %9 : vector<4x8x8xf32>
    %11 = math.exp %10 : vector<4x8x8xf32>
    %cst_12 = arith.constant dense<0.000000e+00> : vector<4x8xf32>
    %12 = vector.multi_reduction <add>, %11, %cst_12 [2] : vector<4x8x8xf32> to vector<4x8xf32>
    %13 = vector.shape_cast %12 : vector<4x8xf32> to vector<4x8x1xf32>
    %14 = tpu.reciprocal %13 {approx = true} : vector<4x8x1xf32> -> vector<4x8x1xf32>
    %15 = vector.broadcast %14 : vector<4x8x1xf32> to vector<4x8x8xf32>
    %16 = arith.mulf %11, %15 : vector<4x8x8xf32>
    %17 = vector.extract_strided_slice %16 {offsets = [0, 0, 0], sizes = [1, 8, 8], strides = [1, 1, 1]} : vector<4x8x8xf32> to vector<1x8x8xf32>
    %18 = vector.shape_cast %17 : vector<1x8x8xf32> to vector<8x8xf32>
    %c0_13 = arith.constant 0 : index
    %c0_14 = arith.constant 0 : index
    %c0_15 = arith.constant 0 : index
    %19 = vector.load %arg6[%c0_13, %c0_14, %c0_15] : memref<1x8x8xf32, #tpu.memory_space<vmem>>, vector<1x8x8xf32>
    %20 = vector.shape_cast %19 : vector<1x8x8xf32> to vector<8x8xf32>
    %21 = vector.shape_cast %18 : vector<8x8xf32> to vector<1x8x8xf32>
    tpu.vector_store %arg6[%c0_13, %c0_14, %c0_15], %21 {strides = array<i32>} : memref<1x8x8xf32, #tpu.memory_space<vmem>>, vector<1x8x8xf32>,
    "tpu.trace_start"() <{level = 10 : i32, message = "hqk,hkd->hqd"}> : () -> ()
    %cst_16 = arith.constant dense<0.000000e+00> : vector<4x8x8xf32>
    %22 = tpu.matmul %16, %5, %cst_16 {dimension_numbers = #tpu.dot_dimension_numbers<[2], [1], [1], [2], [0, 0, 0, 1, 1, 2], [0], [0]>} : vector<4x8x8xf32>, vector<4x8x8xf32>, vector<4x8x8xf32> -> vector<4x8x8xf32>
    "tpu.trace_stop"() : () -> ()
    %c0_17 = arith.constant 0 : index
    %c0_18 = arith.constant 0 : index
    %c0_19 = arith.constant 0 : index
    %c0_20 = arith.constant 0 : index
    %23 = vector.load %arg5[%c0_17, %c0_18, %c0_19, %c0_20] : memref<1x4x8x8xf32, #tpu.memory_space<vmem>>, vector<1x4x8x8xf32>
    %24 = vector.shape_cast %23 : vector<1x4x8x8xf32> to vector<4x8x8xf32>
    %25 = vector.shape_cast %22 : vector<4x8x8xf32> to vector<1x4x8x8xf32>
    tpu.vector_store %arg5[%c0_17, %c0_18, %c0_19, %c0_20], %25 {strides = array<i32>} : memref<1x4x8x8xf32, #tpu.memory_space<vmem>>, vector<1x4x8x8xf32>,
    return
  }
  func.func @transform_0(%arg0: i32, %arg1: i32) -> (i32, i32, i32, i32) {
    %c0_i32 = arith.constant 0 : i32
    %c0_i32_0 = arith.constant 0 : i32
    %c0_i32_1 = arith.constant 0 : i32
    return %arg0, %c0_i32, %arg1, %c0_i32_0 : i32, i32, i32, i32
  }
  func.func @transform_1(%arg0: i32, %arg1: i32) -> (i32, i32, i32, i32) {
    %c0_i32 = arith.constant 0 : i32
    %c0_i32_0 = arith.constant 0 : i32
    %c0_i32_1 = arith.constant 0 : i32
    %c0_i32_2 = arith.constant 0 : i32
    return %arg0, %c0_i32, %c0_i32_0, %c0_i32_1 : i32, i32, i32, i32
  }
  func.func @transform_2(%arg0: i32, %arg1: i32) -> (i32, i32, i32, i32) {
    %c0_i32 = arith.constant 0 : i32
    %c0_i32_0 = arith.constant 0 : i32
    %c0_i32_1 = arith.constant 0 : i32
    %c0_i32_2 = arith.constant 0 : i32
    return %arg0, %c0_i32, %c0_i32_0, %c0_i32_1 : i32, i32, i32, i32
  }
  func.func @transform_3(%arg0: i32, %arg1: i32) -> (i32, i32, i32, i32) {
    %c0_i32 = arith.constant 0 : i32
    %c0_i32_0 = arith.constant 0 : i32
    %c0_i32_1 = arith.constant 0 : i32
    return %arg0, %c0_i32, %arg1, %c0_i32_0 : i32, i32, i32, i32
  }
  func.func @transform_4(%arg0: i32, %arg1: i32) -> (i32, i32, i32) {
    %c0_i32 = arith.constant 0 : i32
    %c0_i32_0 = arith.constant 0 : i32
    return %arg0, %arg1, %c0_i32 : i32, i32, i32
  }
}

module attributes {stable_mosaic.version = 11 : i64} {
  func.func @_linear_kernel(%arg0: i32, %arg1: memref<16x32xf32, #tpu.memory_space<vmem>>, %arg2: memref<32x32xf32, #tpu.memory_space<vmem>>, %arg3: memref<1x32xf32, #tpu.memory_space<vmem>>, %arg4: memref<16x32xf32, #tpu.memory_space<vmem>>) attributes {dimension_semantics = [#tpu.dimension_semantics<parallel>], iteration_bounds = array<i64: 1>, scalar_prefetch = 0 : i64, scratch_operands = 0 : i64, tpu.core_type = #tpu.core_type<tc>, window_params = [{transform_indices = @transform_0, window_bounds = array<i64: 16, 32>}, {pipeline_mode = #tpu.pipeline_mode<synchronous>, transform_indices = @transform_1, window_bounds = array<i64: 32, 32>}, {pipeline_mode = #tpu.pipeline_mode<synchronous>, transform_indices = @transform_2, window_bounds = array<i64: 1, 32>}, {transform_indices = @transform_3, window_bounds = array<i64: 16, 32>}]} {
    %c0 = arith.constant 0 : index
    %c0_0 = arith.constant 0 : index
    %0 = vector.load %arg1[%c0, %c0_0] : memref<16x32xf32, #tpu.memory_space<vmem>>, vector<16x32xf32>
    %c0_1 = arith.constant 0 : index
    %c0_2 = arith.constant 0 : index
    %1 = vector.load %arg2[%c0_1, %c0_2] : memref<32x32xf32, #tpu.memory_space<vmem>>, vector<32x32xf32>
    %cst = arith.constant dense<0.000000e+00> : vector<16x32xf32>
    %2 = tpu.matmul %0, %1, %cst {dimension_numbers = #tpu.dot_dimension_numbers<[1], [0], [0], [1], [0, 0, 1, 1], [], []>} : vector<16x32xf32>, vector<32x32xf32>, vector<16x32xf32> -> vector<16x32xf32>
    %c0_3 = arith.constant 0 : index
    %c0_4 = arith.constant 0 : index
    %3 = vector.load %arg3[%c0_3, %c0_4] : memref<1x32xf32, #tpu.memory_space<vmem>>, vector<1x32xf32>
    %4 = vector.broadcast %3 : vector<1x32xf32> to vector<16x32xf32>
    %5 = arith.addf %2, %4 : vector<16x32xf32>
    %c0_5 = arith.constant 0 : index
    %c0_6 = arith.constant 0 : index
    %6 = vector.load %arg4[%c0_5, %c0_6] : memref<16x32xf32, #tpu.memory_space<vmem>>, vector<16x32xf32>
    tpu.vector_store %arg4[%c0_5, %c0_6], %5 {strides = array<i32>} : memref<16x32xf32, #tpu.memory_space<vmem>>, vector<16x32xf32>,
    return
  }
  func.func @transform_0(%arg0: i32) -> (i32, i32) {
    %c0_i32 = arith.constant 0 : i32
    %c0_i32_0 = arith.constant 0 : i32
    return %arg0, %c0_i32 : i32, i32
  }
  func.func @transform_1(%arg0: i32) -> (i32, i32) {
    %c0_i32 = arith.constant 0 : i32
    %c0_i32_0 = arith.constant 0 : i32
    %c0_i32_1 = arith.constant 0 : i32
    return %c0_i32, %c0_i32_0 : i32, i32
  }
  func.func @transform_2(%arg0: i32) -> (i32, i32) {
    %c0_i32 = arith.constant 0 : i32
    %c0_i32_0 = arith.constant 0 : i32
    %c0_i32_1 = arith.constant 0 : i32
    return %c0_i32, %c0_i32_0 : i32, i32
  }
  func.func @transform_3(%arg0: i32) -> (i32, i32) {
    %c0_i32 = arith.constant 0 : i32
    %c0_i32_0 = arith.constant 0 : i32
    return %arg0, %c0_i32 : i32, i32
  }
}

</mosaic_0001>

<bundles_post_ra>
// kernel: multi_head_attention.6
= control target key start
LH: loop header
LB: loop body
LE: loop exit
PB: predicated region body
PF: predicated region fallthrough
CT: control target
= control target key end

     0   :  { %vm27_vm0 = vcmask 261120   ;;  %s194_s1 = inlined_call_operand.vmem [shape: f32[32,32], index: 1, kind: input, shape index: {}]   ;;  %s195_s0 = inlined_call_operand.vmem [shape: f32[16,32], index: 0, kind: input, shape index: {}]   ;;  %s196_s2 = inlined_call_operand.vmem [shape: f32[1,32], index: 2, kind: input, shape index: {}]   ;;  %s197_s3 = inlined_call_operand.vmem [shape: f32[16,32], index: 3, kind: output, shape index: {}]  }
   0x1   :  { %v16_v0 = vld [vmem:[%s194_s1] sm:$0xff]  ;;  %v17_v1 = vld [vmem:[%s194_s1 + $0x8] sm:$0xff]  ;;  %v18_v2 = vld [vmem:[%s194_s1 + $0x10] sm:$0xff] }
   0x2   :  { %v135_v3 = vpack.c.bf16 %v17_v1, %v16_v0  ;;  %v19_v4 = vld [vmem:[%s194_s1 + $0x18] sm:$0xff]  ;;  %v14_v5 = vld [vmem:[%s195_s0] sm:$0xff]  ;;  %v15_v7 = vld [vmem:[%s195_s0 + $0x8] sm:$0xff] }
   0x3   :  { %v139_v6 = vpack.c.bf16 %v19_v4, %v18_v2  ;;  %132 = vmatprep.mubr.msk.f32.mxu0 %vm27_vm0, %v14_v5  ;;  %v115_v8 = vld [vmem:[%s196_s2] ss:$0 sm:$0xff] }
   0x4   :  { %136 = vmatprep.subr.bf16.mxu0 %v135_v3 }
   0x5   :  { %138 = vmatpush3.bf16.msra.mxu0 %v135_v3 }
   0x6   :  { %140 = vmatprep.subr.bf16.mxu0 %v139_v6 }
   0x9   :  { %142 = vmatpush3.bf16.msra.mxu0 %v139_v6 }
   0xc   :  { %133 = vmatmul.mubr.msk.f32.vlgmr.msra.gmra.mrb[0].mxu0 %vm27_vm0, %v15_v7 }
  0xdf   :  { %v134_v9 = vpop.f32.mrb[0].mxu0 }
  0xe0   :  { %v106_v10 = vadd.f32 %v134_v9, %v115_v8  ;;  %v100_v11 = vpop.f32.mrb[1].mxu0 }
  0xe1   :  { %v101_v12 = vadd.f32 %v115_v8, %v100_v11 }
  0xe2   :  { %110 = vst.msk [vmem:[%s197_s3 + $0x8] sm:$0xff] %vm27_vm0, %v106_v10 }
  0xe3   :  { %109 = vst.msk [vmem:[%s197_s3] sm:$0xff] %vm27_vm0, %v101_v12 }

// kernel: multi_head_attention.5
= control target key start
LH: loop header
LB: loop body
LE: loop exit
PB: predicated region body
PF: predicated region fallthrough
CT: control target
= control target key end

     0   :  { %8 = vsyncpa [#allocation3], 0  ;;  %s185_s12 = smov [#allocation2]   ;;  %s245_s0 = inlined_call_operand.hbm [shape: f32[16,32], index: 0, kind: input, shape index: {}]   ;;  %s246_s1 = inlined_call_operand.vmem [shape: f32[32,32], index: 1, kind: input, shape index: {}]   ;;  %s247_s2 = inlined_call_operand.vmem [shape: f32[1,32], index: 2, kind: input, shape index: {}]   ;;  %s248_s3 = inlined_call_operand.vmem [shape: f32[16,32], index: 3, kind: output, shape index: {}]  }
   0x1   :  { %s14_s13 = sshll.u32 %s185_s12, 4  ;;  %s161_s16 = scalar_lea.hbm %s245_s0, 256  ;;  %s15_s13 = int_to_ptr.vmem [resolvable:$true] %s14_s13 }
   0x2   :  { %p162_p0 = scmp.ne.s32.totalorder %s245_s0, %s161_s16  ;;  %p165_p1 = scmp.lt.u32.totalorder %s161_s16, %s245_s0 }
   0x4   :  { %p167_p2 = pnand %p165_p1, %p162_p0 }
   0x6   :  { %170 = shalt.err (!%p167_p2)
}
   0x7   :  { %s171_s21 = scalar_lea.vmem %s15_s13, 256  ;;  %p176_p4 = scmp.lt.s32.totalorder %s15_s13, %s15_s13 }
   0x8   :  { %p172_p3 = scmp.ne.s32.totalorder %s15_s13, %s171_s21  ;;  %p177_p5 = scmp.lt.s32.totalorder %s171_s21, %s171_s21 }
   0xa   :  { %p178_p6 = por %p177_p5, %p176_p4 }
   0xc   :  { %p179_p7 = pnand %p178_p6, %p172_p3 }
   0xe   :  { %182 = shalt.err (!%p179_p7)
}
   0xf   :  { %s186_s22 = smov 128   ;;  %s187_s23 = smov 8  }
  0x10   :  { %20 = dma.hbm_to_vmem [thread:$0]  %s245_s0, 256, %s15_s13, [#allocation3], %s186_s22, %s186_s22, %s187_s23  }
  0x11   :  { %183 = dma.done.wait [#allocation3], 256  }
  0x12   :  { %184 = vsyncadd [#allocation3], 4294967040  ;;  %vm41_vm0 = vcmask 261120   ;;  %v30_v0 = vld [vmem:[%s246_s1] sm:$0xff]  ;;  %v31_v1 = vld [vmem:[%s246_s1 + $0x8] sm:$0xff] }
  0x13   :  { %v32_v2 = vld [vmem:[%s246_s1 + $0x10] sm:$0xff]  ;;  %v150_v3 = vpack.c.bf16 %v31_v1, %v30_v0  ;;  %v33_v4 = vld [vmem:[%s246_s1 + $0x18] sm:$0xff]  ;;  %v28_v5 = vld [vmem:[#allocation2] sm:$0xff] }
  0x14   :  { %v154_v6 = vpack.c.bf16 %v33_v4, %v32_v2  ;;  %147 = vmatprep.mubr.msk.f32.mxu0 %vm41_vm0, %v28_v5  ;;  %v29_v7 = vld [vmem:[#allocation2 + $0x8] sm:$0xff]  ;;  %v130_v8 = vld [vmem:[%s247_s2] ss:$0 sm:$0xff] }
  0x15   :  { %151 = vmatprep.subr.bf16.mxu0 %v150_v3 }
  0x16   :  { %153 = vmatpush3.bf16.msra.mxu0 %v150_v3 }
  0x17   :  { %155 = vmatprep.subr.bf16.mxu0 %v154_v6 }
  0x1a   :  { %157 = vmatpush3.bf16.msra.mxu0 %v154_v6 }
  0x1d   :  { %148 = vmatmul.mubr.msk.f32.vlgmr.msra.gmra.mrb[0].mxu0 %vm41_vm0, %v29_v7 }
  0xf0   :  { %v149_v9 = vpop.f32.mrb[0].mxu0 }
  0xf1   :  { %v120_v10 = vadd.f32 %v149_v9, %v130_v8  ;;  %v114_v11 = vpop.f32.mrb[1].mxu0 }
  0xf2   :  { %v115_v12 = vadd.f32 %v130_v8, %v114_v11 }
  0xf3   :  { %124 = vst.msk [vmem:[%s248_s3 + $0x8] sm:$0xff] %vm41_vm0, %v120_v10 }
  0xf4   :  { %123 = vst.msk [vmem:[%s248_s3] sm:$0xff] %vm41_vm0, %v115_v12 }
  0xf5   :  { %129 = vsyncpa [#allocation3], 1 }

// kernel: multi_head_attention.9
= control target key start
LH: loop header
LB: loop body
LE: loop exit
PB: predicated region body
PF: predicated region fallthrough
CT: control target
= control target key end

     0   :  { %vm28_vm0 = vcmask 261120   ;;  %s243_s0 = inlined_call_operand.vmem [shape: f32[16,32], index: 0, kind: input, shape index: {}]   ;;  %s244_s1 = inlined_call_operand.vmem [shape: f32[32,32], index: 1, kind: input, shape index: {}]   ;;  %s245_s2 = inlined_call_operand.vmem [shape: f32[1,32], index: 2, kind: input, shape index: {}]   ;;  %s246_s3 = inlined_call_operand.hbm [shape: f32[16,32], index: 3, kind: output, shape index: {}]  }
   0x1   :  { %v17_v0 = vld [vmem:[%s244_s1] sm:$0xff]  ;;  %v18_v1 = vld [vmem:[%s244_s1 + $0x8] sm:$0xff]  ;;  %v19_v2 = vld [vmem:[%s244_s1 + $0x10] sm:$0xff] }
   0x2   :  { %v148_v3 = vpack.c.bf16 %v18_v1, %v17_v0  ;;  %v20_v4 = vld [vmem:[%s244_s1 + $0x18] sm:$0xff]  ;;  %v15_v5 = vld [vmem:[%s243_s0] sm:$0xff] }
   0x3   :  { %v152_v6 = vpack.c.bf16 %v20_v4, %v19_v2  ;;  %145 = vmatprep.mubr.msk.f32.mxu0 %vm28_vm0, %v15_v5 }
   0x4   :  { %8 = vsyncpa [#allocation3], 0  ;;  %149 = vmatprep.subr.bf16.mxu0 %v148_v3  ;;  %v16_v7 = vld [vmem:[%s243_s0 + $0x8] sm:$0xff]  ;;  %v128_v8 = vld [vmem:[%s245_s2] ss:$0 sm:$0xff]  ;;  %s183_s25 = smov [#allocation2]  }
   0x5   :  { %151 = vmatpush3.bf16.msra.mxu0 %v148_v3  ;;  %s117_s26 = sshll.u32 %s183_s25, 4  ;;  %s118_s26 = int_to_ptr.vmem [resolvable:$true] %s117_s26 }
   0x6   :  { %153 = vmatprep.subr.bf16.mxu0 %v152_v6  ;;  %s159_s27 = scalar_lea.vmem %s118_s26, 256  ;;  %p164_p1 = scmp.lt.s32.totalorder %s118_s26, %s118_s26 }
   0x7   :  { %p160_p0 = scmp.ne.s32.totalorder %s118_s26, %s159_s27  ;;  %p165_p2 = scmp.lt.s32.totalorder %s159_s27, %s159_s27 }
   0x9   :  { %155 = vmatpush3.bf16.msra.mxu0 %v152_v6  ;;  %p166_p3 = por %p165_p2, %p164_p1 }
   0xb   :  { %p167_p4 = pnand %p166_p3, %p160_p0 }
   0xc   :  { %146 = vmatmul.mubr.msk.f32.vlgmr.msra.gmra.mrb[0].mxu0 %vm28_vm0, %v16_v7 }
  0xdf   :  { %v147_v9 = vpop.f32.mrb[0].mxu0 }
  0xe0   :  { %v107_v10 = vadd.f32 %v147_v9, %v128_v8  ;;  %v101_v11 = vpop.f32.mrb[1].mxu0 }
  0xe1   :  { %v102_v12 = vadd.f32 %v128_v8, %v101_v11 }
  0xe2   :  { %111 = vst.msk [vmem:[#allocation2 + $0x8] sm:$0xff] %vm28_vm0, %v107_v10 }
  0xe3   :  { %110 = vst.msk [vmem:[#allocation2] sm:$0xff] %vm28_vm0, %v102_v12 }
  0xe4   :  { %170 = shalt.err (!%p167_p4)
}
  0xe5   :  { %s171_s28 = scalar_lea.hbm %s246_s3, 256 }
  0xe6   :  { %p172_p5 = scmp.ne.s32.totalorder %s246_s3, %s171_s28  ;;  %p175_p6 = scmp.lt.u32.totalorder %s171_s28, %s246_s3 }
  0xe8   :  { %p177_p7 = pnand %p175_p6, %p172_p5 }
  0xea   :  { %180 = shalt.err (!%p177_p7)
}
  0xeb   :  { %s184_s6 = smov 128   ;;  %s185_s7 = smov 8  }
  0xec   :  { %123 = dma.vmem_to_hbm [thread:$0]  %s118_s26, 256, %s246_s3, [#allocation3], %s184_s6, %s184_s6, %s185_s7  }
  0xed   :  { %181 = dma.done.wait [#allocation3], 256  }
  0xee   :  { %182 = vsyncadd [#allocation3], 4294967040 }
  0xef   :  { %127 = vsyncpa [#allocation3], 1 }

// kernel: multi_head_attention.8
= control target key start
LH: loop header
LB: loop body
LE: loop exit
PB: predicated region body
PF: predicated region fallthrough
CT: control target
= control target key end

     0   :  { %10 = vsyncpa [#allocation3], 0  ;;  %s1541_s0 = inlined_call_operand.vmem [shape: f32[2,4,8,8], index: 0, kind: input, shape index: {}]   ;;  %s1542_s1 = inlined_call_operand.vmem [shape: f32[2,4,8,8], index: 1, kind: input, shape index: {}]   ;;  %s1543_s2 = inlined_call_operand.vmem [shape: f32[2,4,8,8], index: 2, kind: input, shape index: {}]   ;;  %s1544_s3 = inlined_call_operand.vmem [shape: f32[2,4,8,8], index: 3, kind: output, shape index: {0}]   ;;  %s1545_s4 = inlined_call_operand.hbm [shape: f32[2,8,8], index: 4, kind: output, shape index: {1}]  }
   0x1   :  { %12 = vsyncpa [#allocation3 + $0x1], 0  ;;  %s1371_s15 = smov 0   ;;  %s1373_s16 = smov 0  }
   0x2   :  { %s1375_s17 = smov 0   ;;  %s1377_s18 = smov 0  }
   0x3   :  { %s1379_s19 = smov 0   ;;  %s1381_s20 = smov 0  }
   0x4 LB: > { %s1100_s21 = sadd.s32 4294967295, %s1341_s20   ;;  %s1101_s22 = sadd.s32 4294967294, %s1341_s20   ;;  %s1341_s20 = sphi %s1381_s20, %s18_s20   ;;  %s1337_s19 = sphi %s1379_s19, %s1552_s19   ;;  %s1333_s18 = sphi %s1377_s18, %s1551_s18   ;;  %s1329_s17 = sphi %s1375_s17, %s1550_s17   ;;  %s1325_s16 = sphi %s1373_s16, %s1549_s16   ;;  %s1321_s15 = sphi %s1371_s15, %s1548_s15  }
   0x5   : > { %s30_s23 = sadd.s32 1, %s1337_s19  ;;  %s147_s24 = sadd.s32 1, %s1329_s17 }
   0x6   : > { %p32_p0 = scmp.ge.s32.totalorder %s30_s23, 2  ;;  %p157_p1 = scmp.ne.s32.totalorder %s1329_s17, %s1325_s16 }
   0x7   : > { %p158_p2 = scmp.eq.s32.totalorder %s1100_s21, 1  ;;  %p163_p3 = scmp.ne.s32.totalorder %s1325_s16, %s1321_s15 }
   0x8   : > { %s1554_s23 = smov (%p32_p0, %s30_s23), 0  ;;  %p164_p5 = scmp.eq.s32.totalorder %s1101_s22, 1 }
   0x9   : > { %p1411_p4 = por %p158_p2, %p157_p1  ;;  %s142_s26 = ssub.s32 %s1337_s19, %s1554_s23 }
   0xa   : > { %p1104_p6 = scmp.ge.s32.totalorder %s1341_s20, 1  ;;  %p145_p7 = scmp.eq.s32.totalorder %s142_s26, 0 }
   0xb   : > { %p1418_p8 = por %p164_p5, %p163_p3  ;;  %p209_p9 = scmp.lt.s32.totalorder %s1341_s20, 3 }
   0xc   : > { %s1424_s28 = scalar_select %p145_p7, %s1329_s17, %s147_s24  }
   0xd   : > { %p210_p10 = pnand %p1104_p6, %p209_p9 }
   0xe   : > { %p256_p11 = scmp.lt.s32.totalorder (!%p210_p10), %s1333_s18, 1  ;;  %v1343_v0 = vmov (!%p210_p10), 0.0   ;;  %vm1344_vm0 = vmmov (!%p210_p10), 0   ;;  %vm294_vm1 = vcmask (!%p210_p10), 64512   ;;  %s253_s14 = sand.u32 (!%p210_p10), 1, %s1325_s16  }
   0xf   : > { %213 = sbr.rel (%p210_p10) target bundleno = 777 (0x309), region = 32  ;;  %1150 = vmatprep.subr.mxu0 (!%p210_p10), %v1343_v0  ;;  %1152 = vmatprep.mubr.msk.f32.mxu0 (!%p210_p10), %vm1344_vm0, %v1343_v0  ;;  %s1105_s21 = sshll.u32 (!%p210_p10), %s253_s14, 3 }
  0x10   : > { %1155 = vmatprep.subr.mxu1 (!%p210_p10), %v1343_v0  ;;  %1157 = vmatprep.mubr.msk.f32.mxu1 (!%p210_p10), %vm1344_vm0, %v1343_v0  ;;  %s255_s22 = scalar_lea.vmem (!%p210_p10), [#allocation2], %s1105_s21  ;;  %s1127_s24 = sshll.u32 (!%p210_p10), %s1333_s18, 7 }
  0x11   : > { %s966_s26 = sshll.u32 (!%p210_p10), %s255_s22, 4  ;;  %s1492_s6 = scalar_lea.hbm (!%p210_p10), %s1545_s4, %s1127_s24  ;;  %s967_s26 = int_to_ptr.vmem [resolvable:$true] %s966_s26 }
  0x12   : > { %s1263_s8 = scalar_lea.vmem (!%p210_p10), %s967_s26, 128  ;;  %s1345_s9 = smov (!%p210_p10), [#allocation2]  }
  0x13   : > { %p1264_p12 = scmp.ne.s32.totalorder (!%p210_p10), %s967_s26, %s1263_s8 }
  0x15   : > { %p1265_p13 = pnand (!%p210_p10), %p1264_p12, %p1411_p4 }
  0x16   : > { %s257_s29 = scalar_select %p256_p11, %s1333_s18, 1 }
  0x17   : > { %p1266_p0 = pneg %p1265_p13 }
  0x18   : > { %s1434_s30 = sshll.u32 %s257_s29, 5 }
  0x19   : > { %s268_s7 = scalar_lea.vmem %s1542_s1, %s1434_s30  ;;  %s263_s10 = scalar_lea.vmem %s1541_s0, %s1434_s30 }
  0x1a   : > { %v286_v1 = vld [vmem:[%s268_s7] sm:$0xff]  ;;  %v287_v2 = vld [vmem:[%s268_s7 + $0x8] sm:$0xff]  ;;  %v288_v5 = vld [vmem:[%s268_s7 + $0x10] sm:$0xff]  ;;  %s273_s13 = scalar_lea.vmem %s1543_s2, %s1434_s30 }
  0x1b   : > { %1151 = vmatpush3.xpose.msk.msra.mxu0 %vm294_vm1, %v286_v1  ;;  %v282_v3 = vld [vmem:[%s263_s10] sm:$0xff]  ;;  %1156 = vmatpush3.xpose.msk.msra.mxu1 %vm294_vm1, %v287_v2  ;;  %v283_v4 = vld [vmem:[%s263_s10 + $0x8] sm:$0xff]  ;;  %v289_v6 = vld [vmem:[%s268_s7 + $0x18] sm:$0xff]  ;;  %s949_s7 = scalar_lea.sflag [#allocation3], %s253_s14 }
  0x1c   : > { %1160 = vmatprep.subr.mxu0 %v1343_v0  ;;  %1165 = vmatprep.subr.mxu1 %v1343_v0  ;;  %v284_v7 = vld [vmem:[%s263_s10 + $0x10] sm:$0xff]  ;;  %v285_v8 = vld [vmem:[%s263_s10 + $0x18] sm:$0xff]  ;;  %v290_v41 = vld [vmem:[%s273_s13] sm:$0xff]  ;;  %s1267_s10 = sshll.u32 %s1345_s9, 4  ;;  %s1268_s10 = int_to_ptr.vmem [resolvable:$false] %s1267_s10 }
  0x1d   : > { %v291_v42 = vld [vmem:[%s273_s13 + $0x8] sm:$0xff]  ;;  %v292_v49 = vld [vmem:[%s273_s13 + $0x10] sm:$0xff]  ;;  %v293_v53 = vld [vmem:[%s273_s13 + $0x18] sm:$0xff]  ;;  %s1269_s11 = scalar_lea.vmem %s1268_s10, 256  ;;  %p1270_p1 = scmp.lt.s32.totalorder %s967_s26, %s1268_s10 }
  0x1e   : > { %1153 = vmatmul.mubr.msk.f32.vlgmr.msra.gmra.mrb[0].mxu0 %vm294_vm1, %v282_v3  ;;  %1158 = vmatmul.mubr.msk.f32.vlgmr.msra.gmra.mrb[0].mxu1 %vm294_vm1, %v283_v4  ;;  %p1271_p2 = scmp.lt.s32.totalorder %s1269_s11, %s1263_s8 }
  0x1f   : > { %1161 = vmatpush3.xpose.msk.msra.mxu0 %vm294_vm1, %v288_v5  ;;  %1162 = vmatprep.mubr.msk.f32.mxu0 %vm1344_vm0, %v1343_v0 }
  0x20   : > { %1166 = vmatpush3.xpose.msk.msra.mxu1 %vm294_vm1, %v289_v6  ;;  %1167 = vmatprep.mubr.msk.f32.mxu1 %vm1344_vm0, %v1343_v0  ;;  %p1272_p3 = por %p1271_p2, %p1270_p1 }
  0x21   : > { %1170 = vmatprep.subr.mxu0 %v1343_v0  ;;  %1175 = vmatprep.subr.mxu1 %v1343_v0 }
  0x22   : > { %1163 = vmatmul.mubr.msk.f32.vlgmr.msra.gmra.mrb[2].mxu0 %vm294_vm1, %v284_v7  ;;  %p1273_p5 = pnand %p1272_p3, %p1266_p0 }
  0x23   : > { %1168 = vmatmul.mubr.msk.f32.vlgmr.msra.gmra.mrb[2].mxu1 %vm294_vm1, %v285_v8  ;;  %1172 = vmatprep.mubr.msk.f32.mxu0 %vm1344_vm0, %v1343_v0 }
  0x24   : > { %1177 = vmatprep.mubr.msk.f32.mxu1 %vm1344_vm0, %v1343_v0  ;;  %1171 = vmatpush3.msra.mxu0 %v290_v41 }
  0x25   : > { %1180 = vmatprep.subr.mxu0 %v1343_v0  ;;  %1176 = vmatpush3.msra.mxu1 %v291_v42 }
  0x26   : > { %1185 = vmatprep.subr.mxu1 %v1343_v0 }
  0xf1   : > { %v367_v9 = vpop.f32.mrb[0].mxu0  ;;  %v443_v10 = vpop.f32.mrb[0].mxu1 }
  0xf2   : > { %v1154_v11 = vpop.f32.mrb[1].mxu0  ;;  %v599_v12 = vsel %vm294_vm1, %v367_v9, -inf  ;;  %v1159_v13 = vpop.f32.mrb[1].mxu1  ;;  %v602_v14 = vsel %vm294_vm1, %v443_v10, -inf }
  0xf3   : > { %600 = vmax.xlane.f32.xlu0 %v599_v12 }
  0xf5   : > { %v519_v15 = vpop.f32.mrb[2].mxu0 }
  0xf6   : > { %v1164_v16 = vpop.f32.mrb[3].mxu0  ;;  %v605_v17 = vsel %vm294_vm1, %v519_v15, -inf  ;;  %v595_v18 = vpop.f32.mrb[2].mxu1 }
  0xf7   : > { %603 = vmax.xlane.f32.xlu0 %v602_v14  ;;  %606 = vmax.xlane.f32.xlu1 %v605_v17  ;;  %v1169_v19 = vpop.f32.mrb[3].mxu1  ;;  %v608_v20 = vsel %vm294_vm1, %v595_v18, -inf }
  0xfb   : > { %609 = vmax.xlane.f32.xlu1 %v608_v20 }
 0x180   : > { %v601_v21 = vpop.xlane.xlu0 %600 }
 0x181   : > { %v611_v22 = vsub.f32 %v367_v9, %v601_v21 }
 0x183   : > { %v615_v23 = vmul.f32 1.442695, %v611_v22 }
 0x184   : > { %v604_v24 = vpop.xlane.xlu0 %603  ;;  %v607_v25 = vpop.xlane.xlu1 %606 }
 0x185   : > { %1247 = vpow2.f32 %v615_v23  ;;  %v612_v26 = vsub.f32 %v443_v10, %v604_v24  ;;  %v613_v27 = vsub.f32 %v519_v15, %v607_v25 }
 0x187   : > { %v617_v28 = vmul.f32 1.442695, %v612_v26  ;;  %v619_v29 = vmul.f32 1.442695, %v613_v27 }
 0x188   : > { %v610_v30 = vpop.xlane.xlu1 %609 }
 0x189   : > { %1249 = vpow2.f32 %v617_v28  ;;  %v614_v31 = vsub.f32 %v595_v18, %v610_v30 }
 0x18a   : > { %1251 = vpow2.f32 %v619_v29 }
 0x18b   : > { %v621_v32 = vmul.f32 1.442695, %v614_v31 }
 0x18d   : > { %1253 = vpow2.f32 %v621_v32 }
 0x18f   : > { %v1248_v33 = vpop.eup %1247 }
 0x190   : > { %v623_v34 = vsel %vm294_vm1, %v1248_v33, 0.0 }
 0x191   : > { %624 = vadd.xlane.f32.xlu0 %v623_v34 }
 0x193   : > { %v1250_v35 = vpop.eup %1249 }
 0x194   : > { %v1252_v36 = vpop.eup %1251  ;;  %v626_v37 = vsel %vm294_vm1, %v1250_v35, 0.0 }
 0x195   : > { %627 = vadd.xlane.f32.xlu1 %v626_v37  ;;  %v629_v38 = vsel %vm294_vm1, %v1252_v36, 0.0 }
 0x196   : > { %630 = vadd.xlane.f32.xlu0 %v629_v38 }
 0x197   : > { %v1254_v39 = vpop.eup %1253 }
 0x198   : > { %v632_v40 = vsel %vm294_vm1, %v1254_v39, 0.0 }
 0x199   : > { %633 = vadd.xlane.f32.xlu1 %v632_v40 }
 0x21e   : > { %v625_v43 = vpop.xlane.xlu0 %624 }
 0x21f   : > { %1255 = vrcp.f32 %v625_v43 }
 0x222   : > { %v628_v44 = vpop.xlane.xlu1 %627 }
 0x223   : > { %v631_v45 = vpop.xlane.xlu0 %630  ;;  %1257 = vrcp.f32 %v628_v44 }
 0x224   : > { %1259 = vrcp.f32 %v631_v45 }
 0x226   : > { %v634_v46 = vpop.xlane.xlu1 %633 }
 0x227   : > { %1261 = vrcp.f32 %v634_v46 }
 0x229   : > { %v1256_v47 = vpop.eup %1255 }
 0x22a   : > { %v639_v48 = vmul.f32 %v1256_v47, %v1248_v33 }
 0x22c   : > { %1173 = vmatmul.mubr.msk.f32.vlgmr.msra.gmra.mrb[4].mxu0 %vm294_vm1, %v639_v48  ;;  %643 = vst.msk [vmem:[%s255_s22] sm:$0xff] %vm294_vm1, %v639_v48 }
 0x22d   : > { %v1258_v50 = vpop.eup %1257  ;;  %1181 = vmatpush3.msra.mxu0 %v292_v49  ;;  %1182 = vmatprep.mubr.msk.f32.mxu0 %vm1344_vm0, %v1343_v0 }
 0x22e   : > { %v1260_v51 = vpop.eup %1259  ;;  %v640_v52 = vmul.f32 %v1258_v50, %v1250_v35 }
 0x22f   : > { %v641_v54 = vmul.f32 %v1260_v51, %v1252_v36 }
 0x230   : > { %1178 = vmatmul.mubr.msk.f32.vlgmr.msra.gmra.mrb[4].mxu1 %vm294_vm1, %v640_v52 }
 0x231   : > { %v1262_v55 = vpop.eup %1261  ;;  %1183 = vmatmul.mubr.msk.f32.vlgmr.msra.gmra.mrb[6].mxu0 %vm294_vm1, %v641_v54  ;;  %1186 = vmatpush3.msra.mxu1 %v293_v53 }
 0x232   : > { %v642_v56 = vmul.f32 %v1262_v55, %v1254_v39  ;;  %1187 = vmatprep.mubr.msk.f32.mxu1 %vm1344_vm0, %v1343_v0 }
 0x234   : > { %1188 = vmatmul.mubr.msk.f32.vlgmr.msra.gmra.mrb[6].mxu1 %vm294_vm1, %v642_v56 }
 0x235   : > { %1276 = shalt.err (!%p1273_p5)
}
 0x236   : > { %s1277_s18 = scalar_lea.hbm %s1492_s6, 128  ;;  %s1281_s14 = scalar_lea.hbm %s1545_s4, 256 }
 0x237   : > { %p1278_p6 = scmp.ne.s32.totalorder %s1492_s6, %s1277_s18  ;;  %p1282_p10 = scmp.lt.u32.totalorder %s1492_s6, %s1545_s4 }
 0x238   : > { %p1283_p11 = scmp.lt.u32.totalorder %s1281_s14, %s1277_s18  ;;  %p1285_p13 = scmp.lt.u32.totalorder %s1277_s18, %s1492_s6 }
 0x239   : > { %p1279_p7 = pnand %p1278_p6, %p1411_p4 }
 0x23a   : > { %p1284_p12 = por %p1283_p11, %p1282_p10 }
 0x23b   : > { %p1280_p9 = pneg %p1279_p7 }
 0x23c   : > { %p1286_p0 = por %p1285_p13, %p1284_p12 }
 0x23e   : > { %p1287_p1 = pnand %p1286_p0, %p1280_p9 }
 0x240   : > { %1290 = shalt.err (!%p1287_p1)
}
 0x241   : > { %1190 = dma.vmem_to_hbm [thread:$0]  (%p1411_p4), %s967_s26, 128, %s1492_s6, %s949_s7  }
 0x242   : > { %s281_s5 = scalar_lea.vmem %s1544_s3, %s1434_s30 }
 0x2ff   : > { %v713_v57 = vpop.f32.mrb[4].mxu0 }
 0x300   : > { %936 = vst.msk [vmem:[%s281_s5] sm:$0xff] %vm294_vm1, %v713_v57  ;;  %v1174_v58 = vpop.f32.mrb[5].mxu0 }
 0x303   : > { %v786_v59 = vpop.f32.mrb[4].mxu1 }
 0x304   : > { %937 = vst.msk [vmem:[%s281_s5 + $0x8] sm:$0xff] %vm294_vm1, %v786_v59  ;;  %v859_v60 = vpop.f32.mrb[6].mxu0  ;;  %v1179_v61 = vpop.f32.mrb[5].mxu1 }
 0x305   : > { %938 = vst.msk [vmem:[%s281_s5 + $0x10] sm:$0xff] %vm294_vm1, %v859_v60  ;;  %v1184_v62 = vpop.f32.mrb[7].mxu0 }
 0x307   : > { %v932_v63 = vpop.f32.mrb[6].mxu1 }
 0x308   : > { %939 = vst.msk [vmem:[%s281_s5 + $0x18] sm:$0xff] %vm294_vm1, %v932_v63  ;;  %v1189_v0 = vpop.f32.mrb[7].mxu1 }
 0x309 PF: > { %p1196_p4 = scmp.ge.s32.totalorder %s1341_s20, 2  ;;  %s989_s25 = sand.u32 1, %s1321_s15  }
 0x30a   : > { %s990_s30 = scalar_lea.sflag [#allocation3], %s989_s25 }
 0x30b   : > { %p1193_p2 = pnand %p1196_p4, %p1418_p8 }
 0x30d   : > { %1316 = dma.done.wait (!%p1193_p2), %s990_s30, 128  }
 0x30e   : > { %1318 = vsyncadd (!%p1193_p2), %s990_s30, 4294967168  ;;  %s18_s20 = sadd.s32 1, %s1341_s20   ;;  %s1548_s15 = smov %s1325_s16 }
 0x30f   : > { %p15_p3 = scmp.ge.s32.totalorder %s18_s20, 4   ;;  %s1549_s16 = smov %s1329_s17 }
 0x310   : > { %s1550_s17 = smov %s1424_s28  ;;  %s1551_s18 = smov %s1337_s19 }
 0x311   : > { %s1552_s19 = smov %s1554_s23  ;;  %17 = sbr.rel (!%p15_p3) target bundleno = 4 (0x4), region = 85 }
 0x318   :  { %995 = vsyncpa [#allocation3], 1 }
 0x319   :  { %997 = vsyncpa [#allocation3 + $0x1], 1 }

</bundles_post_ra>
